<compile_context>
chip_gen: v6e
topology: v6e:2x2x1
jax: 0.10.0
libtpu: 0.0.40
codegen_flags: <defaults>
</compile_context>

<pallas_src>
import jax
import jax.numpy as jnp
from jax.experimental import pallas as pl
from jax.experimental.pallas import tpu as pltpu


def _out_kernel(c_ref, x_ref, xt_ref, w1_ref, w2_ref, o_ref):
    T, N, _ = o_ref.shape
    # Folded projections: u[r] = x_r . w1_eff,  v[r] = x_r . w2_eff.
    u = jnp.dot(x_ref[...], w1_ref[...],
                preferred_element_type=jnp.float32)            # (T*N, 1)
    v = jnp.dot(w2_ref[...], xt_ref[...],
                preferred_element_type=jnp.float32)            # (1, T*N)
    u = u + c_ref[0]     # fold combined bias once (T*N adds, not T*N*N)
    # Tiny static unroll over T: each step is an (N,1)+(1,N) broadcast outer-sum.
    for t in range(T):
        z = u[t * N:(t + 1) * N, :] + v[:, t * N:(t + 1) * N]  # (N, N)
        o_ref[t] = z.astype(o_ref.dtype)


def out_forward(x_flat, fc_w, fc_b, out_w, out_b, *, num_nodes, in_seq_len, d_model):
    B = x_flat.shape[0]
    N, T, D = num_nodes, in_seq_len, d_model

    x = x_flat.reshape(B, T * N, D)            # rows = flattened (t, i) pairs
    xt = jnp.swapaxes(x, 1, 2)                 # (B, D, T*N): "j" operand, row form

    # Fold Linear(D->1) into Linear(2D->D)  (exact: no activation in between).
    wo = out_w.reshape(D, 1).astype(jnp.float32)
    w1 = fc_w[:, :D].astype(jnp.float32).T @ wo                    # (D, 1)
    w2 = (fc_w[:, D:].astype(jnp.float32).T @ wo).reshape(1, D)    # (1, D)
    c = (fc_b.astype(jnp.float32) @ wo[:, 0] + out_b[0]).reshape(1).astype(jnp.float32)

    return pl.pallas_call(
        _out_kernel,
        out_shape=jax.ShapeDtypeStruct((B, T, N, N), x.dtype),
        grid_spec=pltpu.PrefetchScalarGridSpec(
            num_scalar_prefetch=0,
            grid=(B,),
            in_specs=[
                # combined scalar bias lives in SMEM (no padded VMEM tile)
                pl.BlockSpec(memory_space=pltpu.MemorySpace.SMEM),
                pl.BlockSpec((None, T * N, D), lambda b: (b, 0, 0)),   # x
                pl.BlockSpec((None, D, T * N), lambda b: (b, 0, 0)),   # x^T
                pl.BlockSpec((D, 1), lambda b: (0, 0)),                # w1_eff
                pl.BlockSpec((1, D), lambda b: (0, 0)),                # w2_eff (row)
            ],
            out_specs=pl.BlockSpec((None, T, N, N), lambda b: (b, 0, 0, 0)),
        ),
        compiler_params=pltpu.CompilerParams(
            dimension_semantics=("parallel",)),
    )(c, x, xt, w1, w2)


if __name__ == "__main__":
    # small shapes: batch=2, in_seq_len=8, num_nodes=8, d_model=32
    B, T, N, D = 2, 8, 8, 32
    key = jax.random.PRNGKey(0)
    k1, k2, k3, k4, k5 = jax.random.split(key, 5)

    x = jax.random.normal(k1, (B, T * N * D), jnp.float32)

    # deterministic PyTorch-style Linear init: U(-1/sqrt(fan_in), 1/sqrt(fan_in))
    bound_fc = 1.0 / (2 * D) ** 0.5
    fc_w = jax.random.uniform(k2, (D, 2 * D), jnp.float32, -bound_fc, bound_fc)
    fc_b = jax.random.uniform(k3, (D,), jnp.float32, -bound_fc, bound_fc)
    bound_out = 1.0 / D ** 0.5
    out_w = jax.random.uniform(k4, (1, D), jnp.float32, -bound_out, bound_out)
    out_b = jax.random.uniform(k5, (1,), jnp.float32, -bound_out, bound_out)

    y = out_forward(x, fc_w, fc_b, out_w, out_b,
                    num_nodes=N, in_seq_len=T, d_model=D)
    jax.block_until_ready(y)

    # pure-JAX reference (mirrors the PyTorch repeat/cat/linear path exactly)
    xr = x.reshape(B, T, N, D)
    xi = jnp.broadcast_to(xr[:, :, :, None, :], (B, T, N, N, D))
    xj = jnp.broadcast_to(xr[:, :, None, :, :], (B, T, N, N, D))
    cat = jnp.concatenate([xi, xj], axis=-1)
    yref = cat @ fc_w.T + fc_b
    yref = (yref @ out_w.T + out_b)[..., 0]

    assert y.shape == (B, T, N, N)
    assert jnp.allclose(y, yref, atol=2e-3, rtol=2e-3), \
        float(jnp.max(jnp.abs(y - yref)))
    print("KERNEL_OK")
</pallas_src>

<mosaic_0001>
module attributes {stable_mosaic.version = 11 : i64} {
  func.func @_out_kernel(%arg0: i32, %arg1: memref<1xf32, #tpu.memory_space<smem>>, %arg2: memref<1x64x32xf32, #tpu.memory_space<vmem>>, %arg3: memref<1x32x64xf32, #tpu.memory_space<vmem>>, %arg4: memref<32x1xf32, #tpu.memory_space<vmem>>, %arg5: memref<1x32xf32, #tpu.memory_space<vmem>>, %arg6: memref<1x8x8x8xf32, #tpu.memory_space<vmem>>) attributes {dimension_semantics = [#tpu.dimension_semantics<parallel>], iteration_bounds = array<i64: 2>, scalar_prefetch = 0 : i64, scratch_operands = 0 : i64, tpu.core_type = #tpu.core_type<tc>, window_params = [{transform_indices = @transform_0, window_bounds = array<i64: 1>}, {transform_indices = @transform_1, window_bounds = array<i64: 1, 64, 32>}, {transform_indices = @transform_2, window_bounds = array<i64: 1, 32, 64>}, {pipeline_mode = #tpu.pipeline_mode<synchronous>, transform_indices = @transform_3, window_bounds = array<i64: 32, 1>}, {pipeline_mode = #tpu.pipeline_mode<synchronous>, transform_indices = @transform_4, window_bounds = array<i64: 1, 32>}, {transform_indices = @transform_5, window_bounds = array<i64: 1, 8, 8, 8>}]} {
    %c0 = arith.constant 0 : index
    %c0_0 = arith.constant 0 : index
    %c0_1 = arith.constant 0 : index
    %0 = vector.load %arg2[%c0, %c0_0, %c0_1] : memref<1x64x32xf32, #tpu.memory_space<vmem>>, vector<1x64x32xf32>
    %1 = vector.shape_cast %0 : vector<1x64x32xf32> to vector<64x32xf32>
    %c0_2 = arith.constant 0 : index
    %c0_3 = arith.constant 0 : index
    %2 = vector.load %arg4[%c0_2, %c0_3] : memref<32x1xf32, #tpu.memory_space<vmem>>, vector<32x1xf32>
    %cst = arith.constant dense<0.000000e+00> : vector<64x1xf32>
    %3 = tpu.matmul %1, %2, %cst {dimension_numbers = #tpu.dot_dimension_numbers<[1], [0], [0], [1], [0, 0, 1, 1], [], []>} : vector<64x32xf32>, vector<32x1xf32>, vector<64x1xf32> -> vector<64x1xf32>
    %c0_4 = arith.constant 0 : index
    %c0_5 = arith.constant 0 : index
    %4 = vector.load %arg5[%c0_4, %c0_5] : memref<1x32xf32, #tpu.memory_space<vmem>>, vector<1x32xf32>
    %c0_6 = arith.constant 0 : index
    %c0_7 = arith.constant 0 : index
    %c0_8 = arith.constant 0 : index
    %5 = vector.load %arg3[%c0_6, %c0_7, %c0_8] : memref<1x32x64xf32, #tpu.memory_space<vmem>>, vector<1x32x64xf32>
    %6 = vector.shape_cast %5 : vector<1x32x64xf32> to vector<32x64xf32>
    %cst_9 = arith.constant dense<0.000000e+00> : vector<1x64xf32>
    %7 = tpu.matmul %4, %6, %cst_9 {dimension_numbers = #tpu.dot_dimension_numbers<[1], [0], [0], [1], [0, 0, 1, 1], [], []>} : vector<1x32xf32>, vector<32x64xf32>, vector<1x64xf32> -> vector<1x64xf32>
    %c0_10 = arith.constant 0 : index
    %8 = memref.load %arg1[%c0_10] : memref<1xf32, #tpu.memory_space<smem>>
    %9 = vector.broadcast %8 : f32 to vector<64x1xf32>
    %10 = arith.addf %3, %9 : vector<64x1xf32>
    %11 = vector.extract_strided_slice %10 {offsets = [0, 0], sizes = [8, 1], strides = [1, 1]} : vector<64x1xf32> to vector<8x1xf32>
    %12 = vector.extract_strided_slice %7 {offsets = [0, 0], sizes = [1, 8], strides = [1, 1]} : vector<1x64xf32> to vector<1x8xf32>
    %13 = vector.broadcast %11 : vector<8x1xf32> to vector<8x8xf32>
    %14 = vector.broadcast %12 : vector<1x8xf32> to vector<8x8xf32>
    %15 = arith.addf %13, %14 : vector<8x8xf32>
    %c0_11 = arith.constant 0 : index
    %c0_12 = arith.constant 0 : index
    %c0_13 = arith.constant 0 : index
    %c0_14 = arith.constant 0 : index
    %16 = vector.load %arg6[%c0_11, %c0_12, %c0_13, %c0_14] : memref<1x8x8x8xf32, #tpu.memory_space<vmem>>, vector<1x1x8x8xf32>
    %17 = vector.shape_cast %16 : vector<1x1x8x8xf32> to vector<8x8xf32>
    %18 = vector.shape_cast %15 : vector<8x8xf32> to vector<1x1x8x8xf32>
    tpu.vector_store %arg6[%c0_11, %c0_12, %c0_13, %c0_14], %18 {strides = array<i32>} : memref<1x8x8x8xf32, #tpu.memory_space<vmem>>, vector<1x1x8x8xf32>,
    %19 = vector.extract_strided_slice %10 {offsets = [8, 0], sizes = [8, 1], strides = [1, 1]} : vector<64x1xf32> to vector<8x1xf32>
    %20 = vector.extract_strided_slice %7 {offsets = [0, 8], sizes = [1, 8], strides = [1, 1]} : vector<1x64xf32> to vector<1x8xf32>
    %21 = vector.broadcast %19 : vector<8x1xf32> to vector<8x8xf32>
    %22 = vector.broadcast %20 : vector<1x8xf32> to vector<8x8xf32>
    %23 = arith.addf %21, %22 : vector<8x8xf32>
    %c0_15 = arith.constant 0 : index
    %c1 = arith.constant 1 : index
    %c0_16 = arith.constant 0 : index
    %c0_17 = arith.constant 0 : index
    %24 = vector.load %arg6[%c0_15, %c1, %c0_16, %c0_17] : memref<1x8x8x8xf32, #tpu.memory_space<vmem>>, vector<1x1x8x8xf32>
    %25 = vector.shape_cast %24 : vector<1x1x8x8xf32> to vector<8x8xf32>
    %26 = vector.shape_cast %23 : vector<8x8xf32> to vector<1x1x8x8xf32>
    tpu.vector_store %arg6[%c0_15, %c1, %c0_16, %c0_17], %26 {strides = array<i32>} : memref<1x8x8x8xf32, #tpu.memory_space<vmem>>, vector<1x1x8x8xf32>,
    %27 = vector.extract_strided_slice %10 {offsets = [16, 0], sizes = [8, 1], strides = [1, 1]} : vector<64x1xf32> to vector<8x1xf32>
    %28 = vector.extract_strided_slice %7 {offsets = [0, 16], sizes = [1, 8], strides = [1, 1]} : vector<1x64xf32> to vector<1x8xf32>
    %29 = vector.broadcast %27 : vector<8x1xf32> to vector<8x8xf32>
    %30 = vector.broadcast %28 : vector<1x8xf32> to vector<8x8xf32>
    %31 = arith.addf %29, %30 : vector<8x8xf32>
    %c0_18 = arith.constant 0 : index
    %c2 = arith.constant 2 : index
    %c0_19 = arith.constant 0 : index
    %c0_20 = arith.constant 0 : index
    %32 = vector.load %arg6[%c0_18, %c2, %c0_19, %c0_20] : memref<1x8x8x8xf32, #tpu.memory_space<vmem>>, vector<1x1x8x8xf32>
    %33 = vector.shape_cast %32 : vector<1x1x8x8xf32> to vector<8x8xf32>
    %34 = vector.shape_cast %31 : vector<8x8xf32> to vector<1x1x8x8xf32>
    tpu.vector_store %arg6[%c0_18, %c2, %c0_19, %c0_20], %34 {strides = array<i32>} : memref<1x8x8x8xf32, #tpu.memory_space<vmem>>, vector<1x1x8x8xf32>,
    %35 = vector.extract_strided_slice %10 {offsets = [24, 0], sizes = [8, 1], strides = [1, 1]} : vector<64x1xf32> to vector<8x1xf32>
    %36 = vector.extract_strided_slice %7 {offsets = [0, 24], sizes = [1, 8], strides = [1, 1]} : vector<1x64xf32> to vector<1x8xf32>
    %37 = vector.broadcast %35 : vector<8x1xf32> to vector<8x8xf32>
    %38 = vector.broadcast %36 : vector<1x8xf32> to vector<8x8xf32>
    %39 = arith.addf %37, %38 : vector<8x8xf32>
    %c0_21 = arith.constant 0 : index
    %c3 = arith.constant 3 : index
    %c0_22 = arith.constant 0 : index
    %c0_23 = arith.constant 0 : index
    %40 = vector.load %arg6[%c0_21, %c3, %c0_22, %c0_23] : memref<1x8x8x8xf32, #tpu.memory_space<vmem>>, vector<1x1x8x8xf32>
    %41 = vector.shape_cast %40 : vector<1x1x8x8xf32> to vector<8x8xf32>
    %42 = vector.shape_cast %39 : vector<8x8xf32> to vector<1x1x8x8xf32>
    tpu.vector_store %arg6[%c0_21, %c3, %c0_22, %c0_23], %42 {strides = array<i32>} : memref<1x8x8x8xf32, #tpu.memory_space<vmem>>, vector<1x1x8x8xf32>,
    %43 = vector.extract_strided_slice %10 {offsets = [32, 0], sizes = [8, 1], strides = [1, 1]} : vector<64x1xf32> to vector<8x1xf32>
    %44 = vector.extract_strided_slice %7 {offsets = [0, 32], sizes = [1, 8], strides = [1, 1]} : vector<1x64xf32> to vector<1x8xf32>
    %45 = vector.broadcast %43 : vector<8x1xf32> to vector<8x8xf32>
    %46 = vector.broadcast %44 : vector<1x8xf32> to vector<8x8xf32>
    %47 = arith.addf %45, %46 : vector<8x8xf32>
    %c0_24 = arith.constant 0 : index
    %c4 = arith.constant 4 : index
    %c0_25 = arith.constant 0 : index
    %c0_26 = arith.constant 0 : index
    %48 = vector.load %arg6[%c0_24, %c4, %c0_25, %c0_26] : memref<1x8x8x8xf32, #tpu.memory_space<vmem>>, vector<1x1x8x8xf32>
    %49 = vector.shape_cast %48 : vector<1x1x8x8xf32> to vector<8x8xf32>
    %50 = vector.shape_cast %47 : vector<8x8xf32> to vector<1x1x8x8xf32>
    tpu.vector_store %arg6[%c0_24, %c4, %c0_25, %c0_26], %50 {strides = array<i32>} : memref<1x8x8x8xf32, #tpu.memory_space<vmem>>, vector<1x1x8x8xf32>,
    %51 = vector.extract_strided_slice %10 {offsets = [40, 0], sizes = [8, 1], strides = [1, 1]} : vector<64x1xf32> to vector<8x1xf32>
    %52 = vector.extract_strided_slice %7 {offsets = [0, 40], sizes = [1, 8], strides = [1, 1]} : vector<1x64xf32> to vector<1x8xf32>
    %53 = vector.broadcast %51 : vector<8x1xf32> to vector<8x8xf32>
    %54 = vector.broadcast %52 : vector<1x8xf32> to vector<8x8xf32>
    %55 = arith.addf %53, %54 : vector<8x8xf32>
    %c0_27 = arith.constant 0 : index
    %c5 = arith.constant 5 : index
    %c0_28 = arith.constant 0 : index
    %c0_29 = arith.constant 0 : index
    %56 = vector.load %arg6[%c0_27, %c5, %c0_28, %c0_29] : memref<1x8x8x8xf32, #tpu.memory_space<vmem>>, vector<1x1x8x8xf32>
    %57 = vector.shape_cast %56 : vector<1x1x8x8xf32> to vector<8x8xf32>
    %58 = vector.shape_cast %55 : vector<8x8xf32> to vector<1x1x8x8xf32>
    tpu.vector_store %arg6[%c0_27, %c5, %c0_28, %c0_29], %58 {strides = array<i32>} : memref<1x8x8x8xf32, #tpu.memory_space<vmem>>, vector<1x1x8x8xf32>,
    %59 = vector.extract_strided_slice %10 {offsets = [48, 0], sizes = [8, 1], strides = [1, 1]} : vector<64x1xf32> to vector<8x1xf32>
    %60 = vector.extract_strided_slice %7 {offsets = [0, 48], sizes = [1, 8], strides = [1, 1]} : vector<1x64xf32> to vector<1x8xf32>
    %61 = vector.broadcast %59 : vector<8x1xf32> to vector<8x8xf32>
    %62 = vector.broadcast %60 : vector<1x8xf32> to vector<8x8xf32>
    %63 = arith.addf %61, %62 : vector<8x8xf32>
    %c0_30 = arith.constant 0 : index
    %c6 = arith.constant 6 : index
    %c0_31 = arith.constant 0 : index
    %c0_32 = arith.constant 0 : index
    %64 = vector.load %arg6[%c0_30, %c6, %c0_31, %c0_32] : memref<1x8x8x8xf32, #tpu.memory_space<vmem>>, vector<1x1x8x8xf32>
    %65 = vector.shape_cast %64 : vector<1x1x8x8xf32> to vector<8x8xf32>
    %66 = vector.shape_cast %63 : vector<8x8xf32> to vector<1x1x8x8xf32>
    tpu.vector_store %arg6[%c0_30, %c6, %c0_31, %c0_32], %66 {strides = array<i32>} : memref<1x8x8x8xf32, #tpu.memory_space<vmem>>, vector<1x1x8x8xf32>,
    %67 = vector.extract_strided_slice %10 {offsets = [56, 0], sizes = [8, 1], strides = [1, 1]} : vector<64x1xf32> to vector<8x1xf32>
    %68 = vector.extract_strided_slice %7 {offsets = [0, 56], sizes = [1, 8], strides = [1, 1]} : vector<1x64xf32> to vector<1x8xf32>
    %69 = vector.broadcast %67 : vector<8x1xf32> to vector<8x8xf32>
    %70 = vector.broadcast %68 : vector<1x8xf32> to vector<8x8xf32>
    %71 = arith.addf %69, %70 : vector<8x8xf32>
    %c0_33 = arith.constant 0 : index
    %c7 = arith.constant 7 : index
    %c0_34 = arith.constant 0 : index
    %c0_35 = arith.constant 0 : index
    %72 = vector.load %arg6[%c0_33, %c7, %c0_34, %c0_35] : memref<1x8x8x8xf32, #tpu.memory_space<vmem>>, vector<1x1x8x8xf32>
    %73 = vector.shape_cast %72 : vector<1x1x8x8xf32> to vector<8x8xf32>
    %74 = vector.shape_cast %71 : vector<8x8xf32> to vector<1x1x8x8xf32>
    tpu.vector_store %arg6[%c0_33, %c7, %c0_34, %c0_35], %74 {strides = array<i32>} : memref<1x8x8x8xf32, #tpu.memory_space<vmem>>, vector<1x1x8x8xf32>,
    return
  }
  func.func @transform_0(%arg0: i32) -> i32 {
    %c0_i32 = arith.constant 0 : i32
    %c0_i32_0 = arith.constant 0 : i32
    return %c0_i32 : i32
  }
  func.func @transform_1(%arg0: i32) -> (i32, i32, i32) {
    %c0_i32 = arith.constant 0 : i32
    %c0_i32_0 = arith.constant 0 : i32
    %c0_i32_1 = arith.constant 0 : i32
    return %arg0, %c0_i32, %c0_i32_0 : i32, i32, i32
  }
  func.func @transform_2(%arg0: i32) -> (i32, i32, i32) {
    %c0_i32 = arith.constant 0 : i32
    %c0_i32_0 = arith.constant 0 : i32
    %c0_i32_1 = arith.constant 0 : i32
    return %arg0, %c0_i32, %c0_i32_0 : i32, i32, i32
  }
  func.func @transform_3(%arg0: i32) -> (i32, i32) {
    %c0_i32 = arith.constant 0 : i32
    %c0_i32_0 = arith.constant 0 : i32
    %c0_i32_1 = arith.constant 0 : i32
    return %c0_i32, %c0_i32_0 : i32, i32
  }
  func.func @transform_4(%arg0: i32) -> (i32, i32) {
    %c0_i32 = arith.constant 0 : i32
    %c0_i32_0 = arith.constant 0 : i32
    %c0_i32_1 = arith.constant 0 : i32
    return %c0_i32, %c0_i32_0 : i32, i32
  }
  func.func @transform_5(%arg0: i32) -> (i32, i32, i32, i32) {
    %c0_i32 = arith.constant 0 : i32
    %c0_i32_0 = arith.constant 0 : i32
    %c0_i32_1 = arith.constant 0 : i32
    %c0_i32_2 = arith.constant 0 : i32
    return %arg0, %c0_i32, %c0_i32_0, %c0_i32_1 : i32, i32, i32, i32
  }
}

</mosaic_0001>

<bundles_post_ra>
// kernel: tpu_custom_call.1
= control target key start
LH: loop header
LB: loop body
LE: loop exit
PB: predicated region body
PF: predicated region fallthrough
CT: control target
= control target key end

     0   :  { %s1051_s0 = inlined_call_operand.<no memory space> [shape: f32[1], index: 0, kind: input, shape index: {}]   ;;  %s1052_s1 = inlined_call_operand.vmem [shape: f32[2,64,32], index: 1, kind: input, shape index: {}]   ;;  %s1053_s2 = inlined_call_operand.vmem [shape: f32[2,32,64], index: 2, kind: input, shape index: {}]   ;;  %s1054_s3 = inlined_call_operand.vmem [shape: f32[32,1], index: 3, kind: input, shape index: {}]   ;;  %s1055_s4 = inlined_call_operand.vmem [shape: f32[1,32], index: 4, kind: input, shape index: {}]   ;;  %s1056_s5 = inlined_call_operand.hbm [shape: f32[2,8,8,8], index: 5, kind: output, shape index: {}]  }
   0x1   :  { %10 = sst [smem:[#allocation2]] %s1051_s0 }
   0x2   :  { %11 = vsyncpa [#allocation4], 0 }
   0x3   :  { %13 = vsyncpa [#allocation4 + $0x1], 0  ;;  %s900_s20 = smov 0   ;;  %s902_s21 = smov 0  }
   0x4   :  { %s904_s22 = smov 0   ;;  %s906_s23 = smov 0  }
   0x5 LB: > { %s921_s0 = sadd.s32 4294967295, %s852_s23   ;;  %s650_s24 = sadd.s32 4294967294, %s852_s23   ;;  %s852_s23 = sphi %s906_s23, %s1062_s23   ;;  %s848_s22 = sphi %s904_s22, %s1061_s22   ;;  %s844_s21 = sphi %s902_s21, %s1060_s21   ;;  %s840_s20 = sphi %s900_s20, %s1059_s20  }
   0x6   : > { %s925_s25 = sadd.s32 1, %s852_s23   ;;  %s141_s26 = sadd.s32 1, %s848_s22 }
   0x7   : > { %s138_s27 = ssub.s32 %s852_s23, %s925_s25  ;;  %p151_p0 = scmp.ne.s32.totalorder %s848_s22, %s844_s21 }
   0x8   : > { %p139_p1 = scmp.eq.s32.totalorder %s138_s27, 0  ;;  %p152_p2 = scmp.eq.s32.totalorder %s921_s0, 1 }
   0x9   : > { %p157_p3 = scmp.ne.s32.totalorder %s844_s21, %s840_s20  ;;  %p158_p4 = scmp.eq.s32.totalorder %s650_s24, 1 }
   0xa   : > { %s936_s28 = scalar_select %p139_p1, %s848_s22, %s141_s26  }
   0xb   : > { %p938_p5 = por %p152_p2, %p151_p0  ;;  %p942_p6 = por %p158_p4, %p157_p3 }
   0xc   : > { %p653_p7 = scmp.ge.s32.totalorder %s852_s23, 1  ;;  %p201_p8 = scmp.lt.s32.totalorder %s852_s23, 3 }
   0xe   : > { %p202_p9 = pnand %p653_p7, %p201_p8 }
   0xf   : > { %p234_p10 = scmp.lt.s32.totalorder (!%p202_p9), %s921_s0, 1  ;;  %s335_s8 = sld [smem:[#allocation2]] (!%p202_p9) }
  0x10   : > { %205 = sbr.rel (%p202_p9) target bundleno = 497 (0x1f1), region = 40  ;;  %s857_s9 = smov (!%p202_p9), 104  }
  0x11   : > { %s858_s10 = smov (!%p202_p9), 112   ;;  %s859_s11 = smov (!%p202_p9), 88  }
  0x12   : > { %s861_s15 = smov (!%p202_p9), 80   ;;  %s862_s16 = smov (!%p202_p9), 120  }
  0x13   : > { %s863_s18 = smov (!%p202_p9), 72  }
  0x15   : > { %v255_v0 = vld [vmem:[%s1054_s3 + $0x18] sm:$0xff]  ;;  %v254_v1 = vld [vmem:[%s1054_s3 + $0x10] sm:$0xff]  ;;  %v854_v2 = vmov 0.0   ;;  %v253_v3 = vld [vmem:[%s1054_s3 + $0x8] sm:$0xff]  ;;  %s235_s12 = scalar_select %p234_p10, %s921_s0, 1  ;;  %vm855_vm0 = vmmov 0   ;;  %v336_v19 = vstv %s335_s8  ;;  %v471_v38 = vlaneseq }
  0x16   : > { %731 = vmatprep.subr.mxu1 %v255_v0  ;;  %700 = vmatprep.subr.mxu0 %v854_v2  ;;  %v252_v4 = vld [vmem:[%s1054_s3] sm:$0xff]  ;;  %vm261_vm1 = vcmask 261120   ;;  %v856_v18 = vmov 0   ;;  %vm476_vm2 = vcmask 64512   ;;  %s864_s8 = smov [#allocation3]  }
  0x17   : > { %735 = vmatpush3.msra.mxu1 %v255_v0  ;;  %708 = vmatprep.mubr.msk.f32.mxu0 %vm855_vm0, %v854_v2  ;;  %s680_s13 = sshll.u32 %s235_s12, 6  ;;  %s681_s14 = sshll.u32 %s235_s12, 5  ;;  %v256_v13 = vld [vmem:[%s1055_s4] sm:$0x1]  ;;  %v472_v39 = vshrl.u32 %v471_v38, 7 }
  0x18   : > { %732 = vmatprep.subr.mxu1 %v254_v1  ;;  %s965_s19 = scalar_lea.vmem %s1052_s1, %s680_s13  ;;  %s243_s27 = scalar_lea.vmem %s1053_s2, %s681_s14  ;;  %790 = vset.pattern.permute.xlu1 %v856_v18 }
  0x19   : > { %736 = vmatpush3.msra.mxu1 %v254_v1  ;;  %v260_v5 = vld [vmem:[%s243_s27 + $0x18] sm:$0xff]  ;;  %v246_v6 = vld [vmem:[%s965_s19 + $0x10] sm:$0xff]  ;;  %v258_v9 = vld [vmem:[%s243_s27 + $0x8] sm:$0xff]  ;;  %791 = vset.pattern.permute.xlu0 %v856_v18  ;;  %v473_v40 = vsub.s32 0, %v472_v39  ;;  %s860_s12 = smov 96   ;;  %s231_s13 = sand.u32 1, %s844_s21  }
  0x1a   : > { %733 = vmatprep.subr.mxu1 %v253_v3  ;;  %v259_v7 = vld [vmem:[%s243_s27 + $0x10] sm:$0xff]  ;;  %701 = vmatpush3.msra.mxu0 %v260_v5  ;;  %v247_v8 = vld [vmem:[%s965_s19 + $0x18] sm:$0xff]  ;;  %v248_v10 = vld [vmem:[%s965_s19 + $0x20] sm:$0xff]  ;;  %s654_s14 = sshll.u32 %s231_s13, 6  ;;  %s1011_s7 = scalar_lea.sflag [#allocation4], %s231_s13 }
  0x1b   : > { %737 = vmatpush3.msra.mxu1 %v253_v3  ;;  %702 = vmatprep.subr.mxu0 %v854_v2  ;;  %v257_v11 = vld [vmem:[%s243_s27] sm:$0xff]  ;;  %v249_v12 = vld [vmem:[%s965_s19 + $0x28] sm:$0xff]  ;;  %v250_v14 = vld [vmem:[%s965_s19 + $0x30] sm:$0xff]  ;;  %s233_s17 = scalar_lea.vmem [#allocation3], %s654_s14 }
  0x1c   : > { %734 = vmatprep.subr.mxu1 %v252_v4  ;;  %722 = vmatprep.mubr.msk.f32.mxu1 %vm261_vm1, %v246_v6  ;;  %v244_v15 = vld [vmem:[%s965_s19] sm:$0xff]  ;;  %v251_v16 = vld [vmem:[%s965_s19 + $0x38] sm:$0xff]  ;;  %v245_v17 = vld [vmem:[%s965_s19 + $0x8] sm:$0xff]  ;;  %s682_s19 = sshll.u32 %s921_s0, 10  ;;  %s576_s24 = sshll.u32 %s233_s17, 4  ;;  %s1006_s24 = int_to_ptr.vmem [resolvable:$true] %s576_s24 }
  0x1d   : > { %738 = vmatpush3.msra.mxu1 %v252_v4  ;;  %703 = vmatpush3.msra.mxu0 %v259_v7  ;;  %s1004_s6 = scalar_lea.hbm %s1056_s5, %s682_s19  ;;  %s792_s0 = scalar_lea.vmem %s1006_s24, 1024 }
  0x1e   : > { %723 = vmatmul.mubr.msk.f32.vlgmr.msra.gmra.mxu1 %vm261_vm1, %v247_v8  ;;  %704 = vmatprep.subr.mxu0 %v854_v2  ;;  %p793_p11 = scmp.ne.s32.totalorder %s1006_s24, %s792_s0 }
  0x1f   : > { %705 = vmatpush3.msra.mxu0 %v258_v9  ;;  %725 = vmatprep.mubr.msk.f32.mxu1 %vm261_vm1, %v248_v10 }
  0x20   : > { %706 = vmatprep.subr.mxu0 %v854_v2  ;;  %p794_p12 = pnand %p793_p11, %p938_p5 }
  0x21   : > { %707 = vmatpush3.msra.mxu0 %v257_v11 }
  0x22   : > { %726 = vmatmul.mubr.msk.f32.gmra.mxu1 %vm261_vm1, %v249_v12  ;;  %709 = vmatmul.mubr.msk.f32.vlgmr.msra.gmra.mxu0 %vm261_vm1, %v256_v13  ;;  %p795_p13 = pneg %p794_p12 }
  0x23   : > { %711 = vmatprep.subr.mxu0 %v255_v0  ;;  %728 = vmatprep.mubr.msk.f32.mxu1 %vm261_vm1, %v250_v14 }
  0x24   : > { %712 = vmatpush3.msra.mxu0 %v255_v0  ;;  %719 = vmatprep.mubr.msk.f32.mxu0 %vm261_vm1, %v244_v15 }
  0x25   : > { %713 = vmatprep.subr.mxu0 %v254_v1 }
  0x26   : > { %714 = vmatpush3.msra.mxu0 %v254_v1  ;;  %729 = vmatmul.mubr.msk.f32.gmra.mxu1 %vm261_vm1, %v251_v16 }
  0x27   : > { %715 = vmatprep.subr.mxu0 %v253_v3 }
  0x28   : > { %716 = vmatpush3.msra.mxu0 %v253_v3 }
  0x29   : > { %717 = vmatprep.subr.mxu0 %v252_v4 }
  0x2a   : > { %718 = vmatpush3.msra.mxu0 %v252_v4 }
  0x2b   : > { %720 = vmatmul.mubr.msk.f32.vlgmr.msra.gmra.mxu0 %vm261_vm1, %v245_v17 }
  0xde   : > { %v724_v20 = vpop.f32.mrf.mxu1 }
  0xdf   : > { %v443_v21 = vadd.f32 %v724_v20, %v336_v19 }
  0xe0   : > { %v437_v22 = vpop.f32.mrf.mxu1 }
  0xe1   : > { %v438_v23 = vadd.f32 %v437_v22, %v336_v19  ;;  %504 = vperm.xlu1 %790, %v443_v21  }
  0xe2   : > { %v727_v24 = vpop.f32.mrf.mxu1  ;;  %v331_v25 = vpop.f32.mrf.mxu0 }
  0xe3   : > { %v453_v26 = vadd.f32 %v727_v24, %v336_v19  ;;  %492 = vperm.xlu0 %791, %v438_v23   ;;  %v474_v41 = vrot.slane %v331_v25, %v473_v40 }
  0xe4   : > { %v447_v27 = vpop.f32.mrf.mxu1  ;;  %v710_v28 = vpop.f32.mrf.mxu0 }
  0xe5   : > { %v448_v29 = vadd.f32 %v447_v27, %v336_v19 }
  0xe6   : > { %v730_v30 = vpop.f32.mrf.mxu1 }
  0xe7   : > { %516 = vperm.xlu1 %790, %v448_v29   ;;  %528 = vperm.xlu0 %791, %v453_v26   ;;  %v463_v37 = vadd.f32 %v730_v30, %v336_v19 }
  0xe8   : > { %v457_v31 = vpop.f32.mrf.mxu1 }
  0xe9   : > { %v458_v32 = vadd.f32 %v457_v31, %v336_v19 }
  0xeb   : > { %540 = vperm.xlu1 %790, %v458_v32   ;;  %v721_v33 = vpop.f32.mrf.mxu0 }
  0xec   : > { %v433_v34 = vadd.f32 %v721_v33, %v336_v19 }
  0xed   : > { %v427_v35 = vpop.f32.mrf.mxu0 }
  0xee   : > { %v428_v36 = vadd.f32 %v427_v35, %v336_v19  ;;  %480 = vperm.xlu0 %791, %v433_v34  }
  0xf0   : > { %468 = vperm.xlu1 %790, %v428_v36  }
  0xf2   : > { %552 = vperm.xlu0 %791, %v463_v37  }
 0x15c   : > { %v505_v42 = vpop.permute.xlu1 %504 }
 0x15d   : > { %v507_v43 = vadd.f32 %v505_v42, %v474_v41 }
 0x15e   : > { %v493_v44 = vpop.permute.xlu0 %492 }
 0x15f   : > { %v495_v45 = vadd.f32 %v493_v44, %v474_v41  ;;  %509 = vrot.lane.b32.xlu0 %v507_v43, %s857_s9  ;;  %s796_s9 = sshll.u32 %s864_s8, 4  ;;  %s797_s9 = int_to_ptr.vmem [resolvable:$false] %s796_s9 }
 0x160   : > { %p799_p0 = scmp.lt.s32.totalorder %s1006_s24, %s797_s9 }
 0x161   : > { %497 = vrot.lane.b32.xlu1 %v495_v45, %s858_s10  ;;  %s798_s10 = scalar_lea.vmem %s797_s9, 2048 }
 0x162   : > { %v517_v46 = vpop.permute.xlu1 %516  ;;  %v529_v47 = vpop.permute.xlu0 %528  ;;  %p800_p1 = scmp.lt.s32.totalorder %s798_s10, %s792_s0 }
 0x163   : > { %v519_v48 = vadd.f32 %v517_v46, %v474_v41  ;;  %v531_v49 = vadd.f32 %v529_v47, %v474_v41 }
 0x164   : > { %p801_p2 = por %p800_p1, %p799_p0 }
 0x165   : > { %533 = vrot.lane.b32.xlu0 %v531_v49, %s859_s11  ;;  %521 = vrot.lane.b32.xlu1 %v519_v48, %s860_s12 }
 0x166   : > { %v541_v50 = vpop.permute.xlu1 %540  ;;  %p802_p3 = pnand %p801_p2, %p795_p13 }
 0x167   : > { %v543_v51 = vadd.f32 %v541_v50, %v474_v41 }
 0x169   : > { %v481_v52 = vpop.permute.xlu0 %480  ;;  %545 = vrot.lane.b32.xlu1 %v543_v51, %s861_s15 }
 0x16a   : > { %v483_v53 = vadd.f32 %v481_v52, %v474_v41 }
 0x16b   : > { %v469_v54 = vpop.permute.xlu1 %468 }
 0x16c   : > { %v475_v55 = vadd.f32 %v474_v41, %v469_v54  ;;  %485 = vrot.lane.b32.xlu0 %v483_v53, %s862_s16 }
 0x16d   : > { %v553_v56 = vpop.permute.xlu0 %552 }
 0x16e   : > { %477 = vst.msk [vmem:[%s233_s17] sm:$0xff] %vm476_vm2, %v475_v55  ;;  %v555_v57 = vadd.f32 %v553_v56, %v474_v41 }
 0x170   : > { %557 = vrot.lane.b32.xlu0 %v555_v57, %s863_s18 }
 0x1d1   : > { %v510_v58 = vpop.permute.xlu0 %509 }
 0x1d2   : > { %670 = vst.msk [vmem:[%s233_s17 + $0x18] sm:$0xff] %vm476_vm2, %v510_v58 }
 0x1d3   : > { %v498_v59 = vpop.permute.xlu1 %497 }
 0x1d4   : > { %669 = vst.msk [vmem:[%s233_s17 + $0x10] sm:$0xff] %vm476_vm2, %v498_v59 }
 0x1d7   : > { %v534_v60 = vpop.permute.xlu0 %533  ;;  %v522_v61 = vpop.permute.xlu1 %521 }
 0x1d8   : > { %672 = vst.msk [vmem:[%s233_s17 + $0x28] sm:$0xff] %vm476_vm2, %v534_v60  ;;  %671 = vst.msk [vmem:[%s233_s17 + $0x20] sm:$0xff] %vm476_vm2, %v522_v61 }
 0x1db   : > { %v546_v62 = vpop.permute.xlu1 %545 }
 0x1dc   : > { %673 = vst.msk [vmem:[%s233_s17 + $0x30] sm:$0xff] %vm476_vm2, %v546_v62 }
 0x1de   : > { %v486_v63 = vpop.permute.xlu0 %485 }
 0x1df   : > { %668 = vst.msk [vmem:[%s233_s17 + $0x8] sm:$0xff] %vm476_vm2, %v486_v63 }
 0x1e2   : > { %v558_v0 = vpop.permute.xlu0 %557 }
 0x1e3   : > { %674 = vst.msk [vmem:[%s233_s17 + $0x38] sm:$0xff] %vm476_vm2, %v558_v0 }
 0x1e4   : > { %805 = shalt.err (!%p802_p3)
}
 0x1e5   : > { %s806_s11 = scalar_lea.hbm %s1004_s6, 1024  ;;  %s810_s14 = scalar_lea.hbm %s1056_s5, 2048 }
 0x1e6   : > { %p807_p4 = scmp.ne.s32.totalorder %s1004_s6, %s806_s11  ;;  %p811_p9 = scmp.lt.s32.totalorder %s1004_s6, %s1056_s5 }
 0x1e7   : > { %p812_p10 = scmp.lt.s32.totalorder %s810_s14, %s806_s11 }
 0x1e8   : > { %p808_p7 = pnand %p807_p4, %p938_p5 }
 0x1e9   : > { %p813_p11 = por %p812_p10, %p811_p9 }
 0x1ea   : > { %p809_p8 = pneg %p808_p7 }
 0x1ec   : > { %p814_p12 = pnand %p813_p11, %p809_p8 }
 0x1ee   : > { %817 = shalt.err (!%p814_p12)
}
 0x1ef   : > { %s865_s17 = smov 128   ;;  %s866_s18 = smov 8  }
 0x1f0   : > { %739 = dma.vmem_to_hbm [thread:$0]  (%p938_p5), %s1006_s24, 1024, %s1004_s6, %s1011_s7, %s865_s17, %s865_s17, %s866_s18  }
 0x1f1 PF: > { %p745_p13 = scmp.ge.s32.totalorder %s852_s23, 2  ;;  %s591_s19 = sand.u32 1, %s840_s20  }
 0x1f2   : > { %s592_s26 = scalar_lea.sflag [#allocation4], %s591_s19 }
 0x1f3   : > { %p742_p0 = pnand %p745_p13, %p942_p6 }
 0x1f5   : > { %p743_p1 = pneg %p742_p0 }
 0x1f7   : > { %835 = dma.done.wait (%p743_p1), %s592_s26, 1024  }
 0x1f8   : > { %837 = vsyncadd (%p743_p1), %s592_s26, 4294966272  ;;  %p16_p2 = scmp.ge.s32.totalorder %s925_s25, 4   ;;  %s1059_s20 = smov %s844_s21 }
 0x1f9   : > { %s1060_s21 = smov %s848_s22  ;;  %s1061_s22 = smov %s936_s28 }
 0x1fa   : > { %s1062_s23 = smov %s925_s25  ;;  %18 = sbr.rel (!%p16_p2) target bundleno = 5 (0x5), region = 85 }
 0x1ff   :  { %597 = vsyncpa [#allocation4], 1 }
 0x200   :  { %599 = vsyncpa [#allocation4 + $0x1], 1 }

</bundles_post_ra>
